<compile_context>
chip_gen: v5e
topology: v5e:2x2
jax: 0.10.0
libtpu: 0.0.40
codegen_flags: <defaults>
</compile_context>

<pallas_src>
import functools

import jax
import jax.numpy as jnp
from jax.experimental import pallas as pl
from jax.experimental.pallas import tpu as pltpu


def _cdiv(a, b):
    return -(-a // b)


def _round_up(x, m):
    return _cdiv(x, m) * m


# ------------------------------------------------------------------
# Pallas kernel
# ------------------------------------------------------------------

def _l2norm_kernel(x_ref, w_ref, o_ref, *, eps):
    """Channel-axis (sublane) L2 normalization of a (C, T) block, scaled by w.

    x_ref: (C, T) block   -- C channels on sublanes, T spatial positions on lanes
    w_ref: (C, 1) column  -- per-channel scale
    o_ref: (C, T) block
    """
    x = x_ref[...].astype(jnp.float32)                     # accumulate in f32
    sumsq = jnp.sum(x * x, axis=0, keepdims=True)          # (1, T) per-pixel ||x||^2
    norm = jnp.sqrt(sumsq) + eps                           # PyTorch eps placement
    inv = 1.0 / norm                                       # one divide per pixel
    w = w_ref[...].astype(jnp.float32)                     # (C, 1)
    o_ref[...] = (x * (inv * w)).astype(o_ref.dtype)


# ------------------------------------------------------------------
# Wrapper
# ------------------------------------------------------------------

def _pick_hw_tile(HW, N, C, itemsize):
    """Lane-axis tile over the flattened H*W dim.

    Keeps a single (C, T) block at <= ~2 MiB (so in+out double buffers fit the
    default scoped VMEM on every generation) and prefers an even total number
    of grid steps so v7x's two TensorCores get balanced work (no-op on
    v5e/v6e, which have a single TensorCore).
    """
    bytes_per_col = max(1, C * itemsize)
    max_lanes = max(128, min(1024, ((2 * 1024 * 1024) // bytes_per_col) // 128 * 128))

    n_tiles = _cdiv(HW, max_lanes)            # fewest tiles respecting VMEM budget
    if (N * n_tiles) % 2 == 1 and HW > 128:   # balance across v7x's 2 TCs
        n_tiles += 1
    if n_tiles == 1:
        return HW                             # single full-extent tile
    return _round_up(_cdiv(HW, n_tiles), 128)  # balanced, lane-aligned tile


def l2norm(x_nchw, weight, eps=1e-10):
    """L2Norm over the channel axis of an NCHW tensor, scaled by `weight`.

    Matches PyTorch L2Norm.forward: out = weight * x / (||x||_C + eps).
    """
    N, C, H, W = x_nchw.shape
    HW = H * W

    # Free, contiguous reshape -- no transpose, no extra HBM traffic.
    x = x_nchw.reshape(N, C, HW)
    w = weight.astype(x.dtype).reshape(C, 1)

    T = _pick_hw_tile(HW, N, C, x.dtype.itemsize)
    grid = (N, _cdiv(HW, T))                  # ragged last HW block handled by Pallas

    out = pl.pallas_call(
        functools.partial(_l2norm_kernel, eps=eps),
        out_shape=jax.ShapeDtypeStruct((N, C, HW), x.dtype),
        grid_spec=pltpu.PrefetchScalarGridSpec(
            num_scalar_prefetch=0,
            grid=grid,
            in_specs=[
                # N dim squeezed; kernel sees a (C, T) channel-major block.
                pl.BlockSpec((None, C, T), lambda n, j: (n, 0, j)),
                # Per-channel scale, same tiny (C, 1) block every step.
                pl.BlockSpec((C, 1), lambda n, j: (0, 0)),
            ],
            out_specs=pl.BlockSpec((None, C, T), lambda n, j: (n, 0, j)),
        ),
        compiler_params=pltpu.CompilerParams(
            dimension_semantics=("parallel", "parallel")),
    )(x, w)

    return out.reshape(N, C, H, W)


# ------------------------------------------------------------------

if __name__ == "__main__":
    key = jax.random.PRNGKey(0)
    k1, k2, k3 = jax.random.split(key, 3)

    def ref_l2norm(x, w, eps=1e-10):
        # Exact PyTorch formula (eps added after the sqrt).
        norm = jnp.sqrt(jnp.sum(x.astype(jnp.float32) ** 2, axis=1, keepdims=True)) + eps
        return (x.astype(jnp.float32) / norm) * w.reshape(1, -1, 1, 1).astype(jnp.float32)

    fwd = jax.jit(l2norm)

    # Small deterministic test case.
    x_small = jax.random.normal(k1, (2, 4, 16, 16), jnp.float32)
    w_small = jnp.full((4,), 20.0, jnp.float32)        # scale = 20
    y_small = jax.block_until_ready(fwd(x_small, w_small))
    assert y_small.shape == x_small.shape, y_small.shape
    assert bool(jnp.all(jnp.isfinite(y_small)))
    assert bool(jnp.allclose(y_small, ref_l2norm(x_small, w_small),
                             rtol=1e-4, atol=1e-5))

    # SSD conv4_3-sized feature map (the real use of this layer).
    x_big = jax.random.normal(k2, (1, 512, 38, 38), jnp.float32)
    w_big = jnp.full((512,), 20.0, jnp.float32)
    y_big = jax.block_until_ready(fwd(x_big, w_big))
    assert y_big.shape == x_big.shape, y_big.shape
    assert bool(jnp.all(jnp.isfinite(y_big)))
    assert bool(jnp.allclose(y_big, ref_l2norm(x_big, w_big),
                             rtol=1e-4, atol=1e-5))

    # bf16 I/O path (halves HBM traffic for bf16 models; accumulation in f32).
    x_bf16 = jax.random.normal(k3, (2, 4, 16, 16), jnp.bfloat16)
    w_bf16 = jnp.full((4,), 20.0, jnp.bfloat16)
    y_bf16 = jax.block_until_ready(fwd(x_bf16, w_bf16))
    assert y_bf16.dtype == jnp.bfloat16 and y_bf16.shape == x_bf16.shape
    assert bool(jnp.allclose(y_bf16.astype(jnp.float32),
                             ref_l2norm(x_bf16, w_bf16),
                             rtol=2e-2, atol=2e-2))

    print("KERNEL_OK")
</pallas_src>

<mosaic_0001>
module attributes {stable_mosaic.version = 11 : i64} {
  func.func @_l2norm_kernel(%arg0: i32, %arg1: i32, %arg2: memref<1x4x256xf32, #tpu.memory_space<vmem>>, %arg3: memref<4x1xf32, #tpu.memory_space<vmem>>, %arg4: memref<1x4x256xf32, #tpu.memory_space<vmem>>) attributes {dimension_semantics = [#tpu.dimension_semantics<parallel>, #tpu.dimension_semantics<parallel>], iteration_bounds = array<i64: 2, 1>, scalar_prefetch = 0 : i64, scratch_operands = 0 : i64, tpu.core_type = #tpu.core_type<tc>, window_params = [{transform_indices = @transform_0, window_bounds = array<i64: 1, 4, 256>}, {pipeline_mode = #tpu.pipeline_mode<synchronous>, transform_indices = @transform_1, window_bounds = array<i64: 4, 1>}, {transform_indices = @transform_2, window_bounds = array<i64: 1, 4, 256>}]} {
    %c0 = arith.constant 0 : index
    %c0_0 = arith.constant 0 : index
    %c0_1 = arith.constant 0 : index
    %0 = vector.load %arg2[%c0, %c0_0, %c0_1] : memref<1x4x256xf32, #tpu.memory_space<vmem>>, vector<1x4x256xf32>
    %1 = vector.shape_cast %0 : vector<1x4x256xf32> to vector<4x256xf32>
    %2 = arith.mulf %1, %1 : vector<4x256xf32>
    %cst = arith.constant dense<0.000000e+00> : vector<256xf32>
    %3 = vector.multi_reduction <add>, %2, %cst [0] : vector<4x256xf32> to vector<256xf32>
    %4 = vector.shape_cast %3 : vector<256xf32> to vector<1x256xf32>
    %5 = math.sqrt %4 : vector<1x256xf32>
    %cst_2 = arith.constant 1.000000e-10 : f32
    %6 = vector.broadcast %cst_2 : f32 to vector<1x256xf32>
    %7 = arith.addf %5, %6 : vector<1x256xf32>
    %cst_3 = arith.constant 1.000000e+00 : f32
    %8 = vector.broadcast %cst_3 : f32 to vector<1x256xf32>
    %9 = arith.divf %8, %7 : vector<1x256xf32>
    %c0_4 = arith.constant 0 : index
    %c0_5 = arith.constant 0 : index
    %10 = vector.load %arg3[%c0_4, %c0_5] : memref<4x1xf32, #tpu.memory_space<vmem>>, vector<4x1xf32>
    %11 = vector.broadcast %9 : vector<1x256xf32> to vector<4x256xf32>
    %12 = vector.broadcast %10 : vector<4x1xf32> to vector<4x256xf32>
    %13 = arith.mulf %11, %12 : vector<4x256xf32>
    %14 = arith.mulf %1, %13 : vector<4x256xf32>
    %c0_6 = arith.constant 0 : index
    %c0_7 = arith.constant 0 : index
    %c0_8 = arith.constant 0 : index
    %15 = vector.load %arg4[%c0_6, %c0_7, %c0_8] : memref<1x4x256xf32, #tpu.memory_space<vmem>>, vector<1x4x256xf32>
    %16 = vector.shape_cast %15 : vector<1x4x256xf32> to vector<4x256xf32>
    %17 = vector.shape_cast %14 : vector<4x256xf32> to vector<1x4x256xf32>
    tpu.vector_store %arg4[%c0_6, %c0_7, %c0_8], %17 {strides = array<i32>} : memref<1x4x256xf32, #tpu.memory_space<vmem>>, vector<1x4x256xf32>,
    return
  }
  func.func @transform_0(%arg0: i32, %arg1: i32) -> (i32, i32, i32) {
    %c0_i32 = arith.constant 0 : i32
    %c0_i32_0 = arith.constant 0 : i32
    return %arg0, %c0_i32, %arg1 : i32, i32, i32
  }
  func.func @transform_1(%arg0: i32, %arg1: i32) -> (i32, i32) {
    %c0_i32 = arith.constant 0 : i32
    %c0_i32_0 = arith.constant 0 : i32
    %c0_i32_1 = arith.constant 0 : i32
    return %c0_i32, %c0_i32_0 : i32, i32
  }
  func.func @transform_2(%arg0: i32, %arg1: i32) -> (i32, i32, i32) {
    %c0_i32 = arith.constant 0 : i32
    %c0_i32_0 = arith.constant 0 : i32
    return %arg0, %c0_i32, %arg1 : i32, i32, i32
  }
}

</mosaic_0001>

<bundles_post_ra>
// kernel: l2norm.1
= control target key start
LH: loop header
LB: loop body
LE: loop exit
PB: predicated region body
PF: predicated region fallthrough
CT: control target
= control target key end

     0   :  { %s451_s9 = smov 0   ;;  %s453_s10 = smov 0   ;;  %s502_s0 = inlined_call_operand.vmem [shape: f32[2,4,256], index: 0, kind: input, shape index: {}]   ;;  %s503_s1 = inlined_call_operand.vmem [shape: f32[4,1], index: 1, kind: input, shape index: {}]   ;;  %s504_s2 = inlined_call_operand.vmem [shape: f32[2,4,256], index: 2, kind: output, shape index: {}]  }
   0x1   :  { %s455_s11 = smov 0  }
   0x2 LB: > { %s24_s12 = sadd.s32 1, %s429_s10  ;;  %p368_p0 = scmp.ge.s32.totalorder %s433_s11, 1  ;;  %s433_s11 = sphi %s455_s11, %s12_s11   ;;  %s429_s10 = sphi %s453_s10, %s506_s10   ;;  %s425_s9 = sphi %s451_s9, %s505_s9  }
   0x3   : > { %p26_p1 = scmp.ge.s32.totalorder %s24_s12, 2  ;;  %p133_p2 = scmp.lt.s32.totalorder %s433_s11, 3 }
   0x5   : > { %s508_s12 = smov (%p26_p1, %s24_s12), 0  ;;  %p134_p3 = pnand %p368_p0, %p133_p2 }
   0x6   : > { %p164_p4 = scmp.lt.s32.totalorder (!%p134_p3), %s425_s9, 1 }
   0x7   : > { %137 = sbr.rel (%p134_p3) target bundleno = 137 (0x89), region = 28 }
   0xc   : > { %v262_v0 = vld [vmem:[%s503_s1] sm:$0xf]  ;;  %v435_v1 = vmov 0   ;;  %s510_s9 = smov (!%p164_p4, %s425_s9), 1  ;;  %vm191_vm0 = vcmask 1043456  }
   0xd   : > { %402 = vset.pattern.permute.xlu0 %v435_v1  ;;  %s375_s15 = sshll.u32 %s510_s9, 3 }
   0xe   : > { %265 = vperm.xlu0 %402, %v262_v0   ;;  %s171_s18 = scalar_lea.vmem %s502_s0, %s375_s15  ;;  %s181_s21 = scalar_lea.vmem %s504_s2, %s375_s15 }
   0xf   : > { %v480_v2 = vld [vmem:[%s171_s18] sm:$0xff] }
  0x10   : > { %v184_v3 = vmul.f32 %v480_v2, %v480_v2 }
  0x12   : > { %186 = vst [vmem:[#allocation1] ss:$2 sm:$0xff] %v184_v3 }
  0x19   : > { %v187_v4 = vld.sshfl [vmem:[#allocation1] sm:$0xff pattern:$0x75316420]  ;;  %v188_v5 = vld.sshfl [vmem:[#allocation1 + $0x8] sm:$0xff pattern:$0x75316420] }
  0x1a   : > { %v192_v6 = vsel %vm191_vm0, %v187_v4, 0.0  ;;  %v199_v7 = vsel %vm191_vm0, %v188_v5, 0.0 }
  0x1b   : > { %v193_v8 = vrot.slane %v192_v6, 4  ;;  %v200_v9 = vrot.slane %v199_v7, 4 }
  0x1d   : > { %v194_v10 = vadd.f32 %v193_v8, %v192_v6  ;;  %v201_v11 = vadd.f32 %v200_v9, %v199_v7 }
  0x1f   : > { %v195_v12 = vrot.slane %v194_v10, 2  ;;  %v202_v13 = vrot.slane %v201_v11, 2 }
  0x21   : > { %v196_v14 = vadd.f32 %v195_v12, %v194_v10  ;;  %v203_v15 = vadd.f32 %v202_v13, %v201_v11 }
  0x23   : > { %v197_v16 = vrot.slane %v196_v14, 1  ;;  %v204_v17 = vrot.slane %v203_v15, 1 }
  0x25   : > { %v198_v18 = vadd.f32 %v197_v16, %v196_v14  ;;  %v205_v19 = vadd.f32 %v204_v17, %v203_v15 }
  0x27   : > { %403 = vrsqrt.f32 %v198_v18  ;;  %vm225_vm1 = vcmp.eq.f32.partialorder %v205_v19, inf  ;;  %vm213_vm2 = vcmp.eq.f32.partialorder %v198_v18, inf  ;;  %v228_v34 = vand.u32 2147483648, %v205_v19 }
  0x28   : > { %405 = vrsqrt.f32 %v205_v19  ;;  %vm227_vm3 = vcmp.eq.f32.partialorder %v205_v19, 0.0  ;;  %v216_v36 = vand.u32 2147483648, %v198_v18  ;;  %vm215_vm4 = vcmp.eq.f32.partialorder %v198_v18, 0.0 }
  0x2d   : > { %v404_v20 = vpop.eup %403 }
  0x2e   : > { %v406_v21 = vpop.eup %405  ;;  %v207_v22 = vmul.f32 %v404_v20, %v198_v18 }
  0x2f   : > { %v219_v23 = vmul.f32 %v406_v21, %v205_v19 }
  0x30   : > { %v208_v25 = vmul.f32 %v404_v20, %v207_v22 }
  0x31   : > { %v220_v24 = vmul.f32 %v406_v21, %v219_v23 }
  0x32   : > { %v209_v27 = vmul.f32 0.5, %v208_v25 }
  0x33   : > { %v221_v26 = vmul.f32 0.5, %v220_v24 }
  0x34   : > { %v210_v29 = vsub.f32 1.5, %v209_v27 }
  0x35   : > { %v222_v28 = vsub.f32 1.5, %v221_v26 }
  0x36   : > { %v211_v31 = vmul.f32 %v404_v20, %v210_v29 }
  0x37   : > { %v223_v30 = vmul.f32 %v406_v21, %v222_v28 }
  0x38   : > { %v212_v33 = vmul.f32 %v211_v31, %v198_v18 }
  0x39   : > { %v224_v32 = vmul.f32 %v223_v30, %v205_v19 }
  0x3a   : > { %v214_v37 = vsel %vm213_vm2, %v198_v18, %v212_v33 }
  0x3b   : > { %v226_v35 = vsel %vm225_vm1, %v205_v19, %v224_v32  ;;  %v217_v39 = vsel %vm215_vm4, %v216_v36, %v214_v37 }
  0x3c   : > { %v229_v38 = vsel %vm227_vm3, %v228_v34, %v226_v35  ;;  %v230_v41 = vadd.f32 1e-10, %v217_v39 }
  0x3d   : > { %v231_v40 = vadd.f32 1e-10, %v229_v38 }
  0x3e   : > { %vm237_vm7 = vweird.f32 %v230_v41  ;;  %v243_v53 = vand.u32 2147483648, %v230_v41  ;;  %v241_v55 = vand.u32 2147483647, %v230_v41 }
  0x3f   : > { %407 = vrcp.f32 %v231_v40  ;;  %vm252_vm5 = vweird.f32 %v231_v40  ;;  %v258_v50 = vand.u32 2147483648, %v231_v40  ;;  %v256_v52 = vand.u32 2147483647, %v231_v40 }
  0x40   : > { %409 = vrcp.f32 %v230_v41  ;;  %v244_v58 = vor.u32 1.1754944e-38, %v243_v53  ;;  %vm242_vm12 = vcmp.eq.f32.partialorder %v241_v55, 8.507059e+37 }
  0x41   : > { %v259_v56 = vor.u32 1.1754944e-38, %v258_v50  ;;  %vm257_vm11 = vcmp.eq.f32.partialorder %v256_v52, 8.507059e+37 }
  0x45   : > { %v408_v42 = vpop.eup %407 }
  0x46   : > { %v410_v43 = vpop.eup %409  ;;  %v248_v44 = vmul.f32 %v408_v42, %v231_v40  ;;  %vm253_vm6 = vweird.f32 %v408_v42 }
  0x47   : > { %v233_v45 = vmul.f32 %v410_v43, %v230_v41  ;;  %vm238_vm8 = vweird.f32 %v410_v43  ;;  %vm254_vm9 = vmor %vm252_vm5, %vm253_vm6 }
  0x48   : > { %v249_v46 = vsub.f32 1.0, %v248_v44  ;;  %vm239_vm10 = vmor %vm237_vm7, %vm238_vm8 }
  0x49   : > { %v234_v47 = vsub.f32 1.0, %v233_v45 }
  0x4a   : > { %v250_v48 = vmul.f32 %v408_v42, %v249_v46 }
  0x4b   : > { %v235_v49 = vmul.f32 %v410_v43, %v234_v47 }
  0x4c   : > { %v251_v51 = vadd.f32 %v408_v42, %v250_v48 }
  0x4d   : > { %v236_v54 = vadd.f32 %v410_v43, %v235_v49 }
  0x4e   : > { %v255_v57 = vsel %vm254_vm9, %v408_v42, %v251_v51 }
  0x4f   : > { %v240_v59 = vsel %vm239_vm10, %v410_v43, %v236_v54  ;;  %v260_v60 = vsel %vm257_vm11, %v259_v56, %v255_v57 }
  0x50   : > { %v245_v62 = vsel %vm242_vm12, %v244_v58, %v240_v59 }
  0x80   : > { %v266_v61 = vpop.permute.xlu0 %265 }
  0x81   : > { %v269_v63 = vmul.f32 %v266_v61, %v260_v60  ;;  %v268_v0 = vmul.f32 %v266_v61, %v245_v62 }
  0x83   : > { %v272_v1 = vrot.slane %v269_v63, 4 }
  0x85   : > { %v273_v3 = vsel %vm191_vm0, %v268_v0, %v272_v1 }
  0x86   : > { %v275_v4 = vmul.f32 %v273_v3, %v480_v2 }
  0x88   : > { %276 = vst [vmem:[%s181_s21] sm:$0xff] %v275_v4 }
  0x89 PF: > { %s12_s11 = sadd.s32 1, %s433_s11   ;;  %s505_s9 = smov %s429_s10 }
  0x8a   : > { %p9_p5 = scmp.ge.s32.totalorder %s12_s11, 4   ;;  %s506_s10 = smov %s508_s12 }
  0x8c   :  { %11 = sbr.rel (!%p9_p5) target bundleno = 2 (0x2), region = 58 }

</bundles_post_ra>
